<compile_context>
chip_gen: v7x
topology: tpu7x:2x2x1
jax: 0.10.0
libtpu: 0.0.40
codegen_flags: <defaults>
</compile_context>

<pallas_src>
import functools
import math

import jax
import jax.numpy as jnp
from jax import lax
from jax.experimental import pallas as pl
from jax.experimental.pallas import tpu as pltpu

LN_EPS = 1e-5
_INV_SQRT2 = 1.0 / math.sqrt(2.0)
_TANH_C = math.sqrt(2.0 / math.pi)
_MIB = 1024 * 1024


def _round_up(n, m):
    return ((n + m - 1) // m) * m


def _layernorm(x, gamma, beta):
    mu = jnp.mean(x, axis=-1, keepdims=True)
    xc = x - mu
    var = jnp.mean(xc * xc, axis=-1, keepdims=True)
    return xc * lax.rsqrt(var + LN_EPS) * gamma + beta


def _gelu(x, approx):
    if approx:
        # tanh approximation -> EUP slot (useful on v5e where erf's f32 polynomial
        # competes with LN math for the 4 VALU slots). Opt-in only.
        return 0.5 * x * (1.0 + jnp.tanh(_TANH_C * (x + 0.044715 * x * x * x)))
    # PyTorch nn.GELU default (exact erf); multiply by precomputed 1/sqrt(2).
    return 0.5 * x * (1.0 + lax.erf(x * _INV_SQRT2))


def base_encoder_kernel(
    x_ref,                 # (TM, D)  input rows
    g1_ref, b1_ref,        # (1, D)   LayerNorm1 weight / bias (f32)
    wenc_ref, benc_ref,    # (D, D) matmul dtype, (1, D) f32  synthetic encoder_layer Linear
    g2_ref, b2_ref,        # (1, D)   LayerNorm2 weight / bias (f32)
    w2_ref, bias2_ref,     # (D, D) matmul dtype, (1, D) f32  stage_2_layer Linear
    o_ref,                 # (TM, D)  output rows
    *,
    approx_gelu,
):
    x = x_ref[...].astype(jnp.float32)

    # Resident (1, D) vectors: read once (already f32, cast done in wrapper).
    g1 = g1_ref[...]
    b1 = b1_ref[...]
    g2 = g2_ref[...]
    b2 = b2_ref[...]
    b_enc = benc_ref[...]
    bias2 = bias2_ref[...]

    # --- norm_layer_1 ---
    ln1 = _layernorm(x, g1, b1)

    # --- encoder_layer (synthetic deterministic Linear), residual=False ---
    # bf16 MXU inputs, f32 accumulation. Weights already in matmul dtype (wrapper cast).
    x_enc = jnp.dot(ln1.astype(wenc_ref.dtype), wenc_ref[...],
                    preferred_element_type=jnp.float32) + b_enc

    # --- norm_layer_2 ---
    ln2 = _layernorm(x_enc, g2, b2)

    # --- stage_2_layer = Linear + GELU ---
    h = jnp.dot(ln2.astype(w2_ref.dtype), w2_ref[...],
                preferred_element_type=jnp.float32) + bias2
    o_ref[...] = _gelu(h, approx_gelu).astype(o_ref.dtype)


def _vmem_capacity_bytes():
    """Trace-time hardware query; conservative fallback if unavailable."""
    try:
        return int(pltpu.get_tpu_info().vmem_capacity_bytes)
    except Exception:
        return 64 * _MIB   # v7x per-TensorCore capacity (smallest of the three gens)


def _vmem_estimate(tile_m, D, w_itemsize, x_itemsize, o_itemsize):
    """Rough VMEM footprint estimate for a given row tile."""
    weights = 2 * D * D * w_itemsize                        # two (D,D) weights, single-buffered
    vecs = 6 * D * 4                                        # gammas/betas/biases, single-buffered
    io_tiles = 2 * tile_m * D * (x_itemsize + o_itemsize)   # double-buffered in+out row tiles
    interm = 8 * tile_m * D * 4                             # f32 intermediates (ln1/x_enc/ln2/h)
    return int((weights + vecs + io_tiles + interm) * 1.25)


@functools.partial(
    jax.jit, static_argnames=("tile_m", "matmul_dtype", "out_dtype", "approx_gelu"))
def base_encoder_forward(x, params, tile_m=None, matmul_dtype=jnp.bfloat16,
                         out_dtype=None, approx_gelu=False):
    """x: (B, S, D). params: dict of kernel parameters.

    tile_m=None -> auto-select largest of {1024, 512, 256, 128} fitting the VMEM budget.
    out_dtype=None -> output matches x.dtype (pass jnp.bfloat16 for bf16 I/O traffic win).
    """
    B, S, D = x.shape
    assert D % 128 == 0, "token_embed_dim must be a multiple of 128 lanes"
    M = B * S
    out_dt = jnp.dtype(out_dtype) if out_dtype is not None else x.dtype
    w_itemsize = jnp.dtype(matmul_dtype).itemsize
    x_itemsize = jnp.dtype(x.dtype).itemsize
    o_itemsize = jnp.dtype(out_dt).itemsize

    # Generation-aware VMEM budget: leave headroom (v7x: 64-16=48 MiB; v5e/v6e: 128-16=112 MiB).
    capacity = _vmem_capacity_bytes()
    budget = capacity - max(16 * _MIB, capacity // 8)

    if tile_m is None:
        tm = 128
        for cand in (1024, 512, 256, 128):
            if _vmem_estimate(cand, D, w_itemsize, x_itemsize, o_itemsize) <= budget:
                tm = cand
                break
    else:
        tm = int(tile_m)

    # Clamp to the problem size (multiple of 8 sublanes). Also ensure >= 2 grid steps
    # so the "parallel" axis actually shards across v7x's two TensorCores.
    tm = min(tm, _round_up(M, 8))
    if M > 8:
        tm = min(tm, _round_up(pl.cdiv(M, 2), 8))
    tm = max(8, _round_up(tm, 8))
    grid = pl.cdiv(M, tm)   # no padding: Pallas masks the partial final block

    x2d = x.reshape(M, D)

    # One-time casts in the wrapper (not per grid step inside the kernel).
    w_enc = params["w_enc"].astype(matmul_dtype)
    w2 = params["w2"].astype(matmul_dtype)
    g1 = params["g1"].astype(jnp.float32)
    b1 = params["b1"].astype(jnp.float32)
    g2 = params["g2"].astype(jnp.float32)
    b2 = params["b2"].astype(jnp.float32)
    b_enc = params["b_enc"].astype(jnp.float32)
    bias2 = params["bias2"].astype(jnp.float32)

    row_spec = pl.BlockSpec((tm, D), lambda i: (i, 0))
    # Resident operands: constant index_map -> single-buffer to halve their VMEM cost.
    vec_spec = pl.BlockSpec((1, D), lambda i: (0, 0), pipeline_mode=pl.Buffered(1))
    mat_spec = pl.BlockSpec((D, D), lambda i: (0, 0), pipeline_mode=pl.Buffered(1))

    est = _vmem_estimate(tm, D, w_itemsize, x_itemsize, o_itemsize)
    vmem_limit = None if est <= 16 * _MIB else min(est, budget)

    compiler_params = pltpu.CompilerParams(
        dimension_semantics=("parallel",),
        vmem_limit_bytes=vmem_limit,
    )

    cost = pl.CostEstimate(
        flops=int(4 * M * D * D + 12 * M * D),              # two (M,D)x(D,D) matmuls + LN/bias
        transcendentals=int(M * D + 2 * M),                 # gelu erf/tanh + LN rsqrt
        bytes_accessed=int(M * D * (x_itemsize + o_itemsize)
                           + 2 * D * D * w_itemsize + 6 * D * 4),
    )

    out2d = pl.pallas_call(
        functools.partial(base_encoder_kernel, approx_gelu=approx_gelu),
        out_shape=jax.ShapeDtypeStruct((M, D), out_dt),
        grid_spec=pltpu.PrefetchScalarGridSpec(
            num_scalar_prefetch=0,
            grid=(grid,),
            in_specs=[
                row_spec,            # x rows
                vec_spec, vec_spec,  # ln1 gamma, beta
                mat_spec, vec_spec,  # encoder W, b
                vec_spec, vec_spec,  # ln2 gamma, beta
                mat_spec, vec_spec,  # stage2 W, b
            ],
            out_specs=row_spec,
        ),
        compiler_params=compiler_params,
        cost_estimate=cost,
    )(
        x2d,
        g1, b1,
        w_enc, b_enc,
        g2, b2,
        w2, bias2,
    )
    return out2d.reshape(B, S, D)


def init_params(key, D):
    k1, k2 = jax.random.split(key, 2)
    scale = 1.0 / math.sqrt(D)
    return {
        # LayerNorm defaults: weight=1, bias=0
        "g1": jnp.ones((1, D), jnp.float32),
        "b1": jnp.zeros((1, D), jnp.float32),
        "g2": jnp.ones((1, D), jnp.float32),
        "b2": jnp.zeros((1, D), jnp.float32),
        # synthetic encoder_layer Linear (deterministic)
        "w_enc": (jax.random.normal(k1, (D, D), jnp.float32) * scale),
        "b_enc": jnp.zeros((1, D), jnp.float32),
        # stage_2_layer Linear
        "w2": (jax.random.normal(k2, (D, D), jnp.float32) * scale),
        "bias2": jnp.zeros((1, D), jnp.float32),
    }


def reference_forward(x, params):
    """Pure-JAX f32 reference of the same forward for correctness checking."""
    def ln(v, g, b):
        mu = jnp.mean(v, axis=-1, keepdims=True)
        vc = v - mu
        var = jnp.mean(vc * vc, axis=-1, keepdims=True)
        return vc * lax.rsqrt(var + LN_EPS) * g + b

    ln1 = ln(x, params["g1"][0], params["b1"][0])
    x_enc = ln1 @ params["w_enc"] + params["b_enc"][0]
    ln2 = ln(x_enc, params["g2"][0], params["b2"][0])
    h = ln2 @ params["w2"] + params["bias2"][0]
    return jax.nn.gelu(h, approximate=False)


if __name__ == "__main__":
    key = jax.random.PRNGKey(0)
    kx, kp, kx2 = jax.random.split(key, 3)
    D = 128  # multiple of 128 lanes
    params = init_params(kp, D)

    # --- Test 1: tile-aligned shapes (B*S divisible by the row tile) ---
    B, S = 2, 8
    x = jax.random.normal(kx, (B, S, D), jnp.float32)
    ref = reference_forward(x, params)

    # f32 matmul path: tight tolerance, proves the fused semantics exactly.
    out_f32 = jax.block_until_ready(base_encoder_forward(x, params, matmul_dtype=jnp.float32))
    assert out_f32.shape == (B, S, D)
    assert jnp.allclose(out_f32, ref, atol=1e-4, rtol=1e-4), "f32 path mismatch vs reference"

    # Default (fast) bf16-input / f32-accumulate path: relaxed tolerance vs f32 reference.
    out_bf16 = jax.block_until_ready(base_encoder_forward(x, params))
    assert out_bf16.shape == (B, S, D)
    assert jnp.allclose(out_bf16, ref, atol=5e-2, rtol=5e-2), "bf16 path mismatch vs reference"

    # --- Test 2: ragged B*S (exercises the masked partial final block, no padding) ---
    B2, S2 = 3, 5
    x_r = jax.random.normal(kx2, (B2, S2, D), jnp.float32)
    ref_r = reference_forward(x_r, params)
    out_r = jax.block_until_ready(base_encoder_forward(x_r, params, matmul_dtype=jnp.float32))
    assert out_r.shape == (B2, S2, D)
    assert jnp.allclose(out_r, ref_r, atol=1e-4, rtol=1e-4), "ragged-M path mismatch vs reference"

    print("KERNEL_OK")
</pallas_src>

<mosaic_0001>
module attributes {stable_mosaic.version = 11 : i64} {
  func.func @base_encoder_kernel(%arg0: i32, %arg1: memref<8x128xf32, #tpu.memory_space<vmem>>, %arg2: memref<1x128xf32, #tpu.memory_space<vmem>>, %arg3: memref<1x128xf32, #tpu.memory_space<vmem>>, %arg4: memref<128x128xf32, #tpu.memory_space<vmem>>, %arg5: memref<1x128xf32, #tpu.memory_space<vmem>>, %arg6: memref<1x128xf32, #tpu.memory_space<vmem>>, %arg7: memref<1x128xf32, #tpu.memory_space<vmem>>, %arg8: memref<128x128xf32, #tpu.memory_space<vmem>>, %arg9: memref<1x128xf32, #tpu.memory_space<vmem>>, %arg10: memref<8x128xf32, #tpu.memory_space<vmem>>) attributes {dimension_semantics = [#tpu.dimension_semantics<parallel>], iteration_bounds = array<i64: 2>, scalar_prefetch = 0 : i64, scratch_operands = 0 : i64, tpu.core_type = #tpu.core_type<tc>, window_params = [{transform_indices = @transform_0, window_bounds = array<i64: 8, 128>}, {pipeline_mode = #tpu.pipeline_mode<synchronous>, transform_indices = @transform_1, window_bounds = array<i64: 1, 128>}, {pipeline_mode = #tpu.pipeline_mode<synchronous>, transform_indices = @transform_2, window_bounds = array<i64: 1, 128>}, {pipeline_mode = #tpu.pipeline_mode<synchronous>, transform_indices = @transform_3, window_bounds = array<i64: 128, 128>}, {pipeline_mode = #tpu.pipeline_mode<synchronous>, transform_indices = @transform_4, window_bounds = array<i64: 1, 128>}, {pipeline_mode = #tpu.pipeline_mode<synchronous>, transform_indices = @transform_5, window_bounds = array<i64: 1, 128>}, {pipeline_mode = #tpu.pipeline_mode<synchronous>, transform_indices = @transform_6, window_bounds = array<i64: 1, 128>}, {pipeline_mode = #tpu.pipeline_mode<synchronous>, transform_indices = @transform_7, window_bounds = array<i64: 128, 128>}, {pipeline_mode = #tpu.pipeline_mode<synchronous>, transform_indices = @transform_8, window_bounds = array<i64: 1, 128>}, {transform_indices = @transform_9, window_bounds = array<i64: 8, 128>}]} {
    %c0 = arith.constant 0 : index
    %c0_0 = arith.constant 0 : index
    %0 = vector.load %arg1[%c0, %c0_0] : memref<8x128xf32, #tpu.memory_space<vmem>>, vector<8x128xf32>
    %c0_1 = arith.constant 0 : index
    %c0_2 = arith.constant 0 : index
    %1 = vector.load %arg2[%c0_1, %c0_2] : memref<1x128xf32, #tpu.memory_space<vmem>>, vector<1x128xf32>
    %c0_3 = arith.constant 0 : index
    %c0_4 = arith.constant 0 : index
    %2 = vector.load %arg3[%c0_3, %c0_4] : memref<1x128xf32, #tpu.memory_space<vmem>>, vector<1x128xf32>
    %c0_5 = arith.constant 0 : index
    %c0_6 = arith.constant 0 : index
    %3 = vector.load %arg6[%c0_5, %c0_6] : memref<1x128xf32, #tpu.memory_space<vmem>>, vector<1x128xf32>
    %c0_7 = arith.constant 0 : index
    %c0_8 = arith.constant 0 : index
    %4 = vector.load %arg7[%c0_7, %c0_8] : memref<1x128xf32, #tpu.memory_space<vmem>>, vector<1x128xf32>
    %c0_9 = arith.constant 0 : index
    %c0_10 = arith.constant 0 : index
    %5 = vector.load %arg5[%c0_9, %c0_10] : memref<1x128xf32, #tpu.memory_space<vmem>>, vector<1x128xf32>
    %c0_11 = arith.constant 0 : index
    %c0_12 = arith.constant 0 : index
    %6 = vector.load %arg9[%c0_11, %c0_12] : memref<1x128xf32, #tpu.memory_space<vmem>>, vector<1x128xf32>
    %cst = arith.constant dense<0.000000e+00> : vector<8xf32>
    %7 = vector.multi_reduction <add>, %0, %cst [1] : vector<8x128xf32> to vector<8xf32>
    %8 = vector.shape_cast %7 : vector<8xf32> to vector<8x1xf32>
    %cst_13 = arith.constant 1.280000e+02 : f32
    %9 = vector.broadcast %cst_13 : f32 to vector<8x1xf32>
    %10 = arith.divf %8, %9 : vector<8x1xf32>
    %11 = vector.broadcast %10 : vector<8x1xf32> to vector<8x128xf32>
    %12 = arith.subf %0, %11 : vector<8x128xf32>
    %13 = arith.mulf %12, %12 : vector<8x128xf32>
    %cst_14 = arith.constant dense<0.000000e+00> : vector<8xf32>
    %14 = vector.multi_reduction <add>, %13, %cst_14 [1] : vector<8x128xf32> to vector<8xf32>
    %15 = vector.shape_cast %14 : vector<8xf32> to vector<8x1xf32>
    %cst_15 = arith.constant 1.280000e+02 : f32
    %16 = vector.broadcast %cst_15 : f32 to vector<8x1xf32>
    %17 = arith.divf %15, %16 : vector<8x1xf32>
    %cst_16 = arith.constant 9.99999974E-6 : f32
    %18 = vector.broadcast %cst_16 : f32 to vector<8x1xf32>
    %19 = arith.addf %17, %18 : vector<8x1xf32>
    %20 = math.rsqrt %19 : vector<8x1xf32>
    %21 = vector.broadcast %20 : vector<8x1xf32> to vector<8x128xf32>
    %22 = arith.mulf %12, %21 : vector<8x128xf32>
    %23 = vector.broadcast %1 : vector<1x128xf32> to vector<8x128xf32>
    %24 = arith.mulf %22, %23 : vector<8x128xf32>
    %25 = vector.broadcast %2 : vector<1x128xf32> to vector<8x128xf32>
    %26 = arith.addf %24, %25 : vector<8x128xf32>
    %c0_17 = arith.constant 0 : index
    %c0_18 = arith.constant 0 : index
    %27 = vector.load %arg4[%c0_17, %c0_18] : memref<128x128xf32, #tpu.memory_space<vmem>>, vector<128x128xf32>
    %cst_19 = arith.constant dense<0.000000e+00> : vector<8x128xf32>
    %28 = tpu.matmul %26, %27, %cst_19 {dimension_numbers = #tpu.dot_dimension_numbers<[1], [0], [0], [1], [0, 0, 1, 1], [], []>} : vector<8x128xf32>, vector<128x128xf32>, vector<8x128xf32> -> vector<8x128xf32>
    %29 = vector.broadcast %5 : vector<1x128xf32> to vector<8x128xf32>
    %30 = arith.addf %28, %29 : vector<8x128xf32>
    %cst_20 = arith.constant dense<0.000000e+00> : vector<8xf32>
    %31 = vector.multi_reduction <add>, %30, %cst_20 [1] : vector<8x128xf32> to vector<8xf32>
    %32 = vector.shape_cast %31 : vector<8xf32> to vector<8x1xf32>
    %cst_21 = arith.constant 1.280000e+02 : f32
    %33 = vector.broadcast %cst_21 : f32 to vector<8x1xf32>
    %34 = arith.divf %32, %33 : vector<8x1xf32>
    %35 = vector.broadcast %34 : vector<8x1xf32> to vector<8x128xf32>
    %36 = arith.subf %30, %35 : vector<8x128xf32>
    %37 = arith.mulf %36, %36 : vector<8x128xf32>
    %cst_22 = arith.constant dense<0.000000e+00> : vector<8xf32>
    %38 = vector.multi_reduction <add>, %37, %cst_22 [1] : vector<8x128xf32> to vector<8xf32>
    %39 = vector.shape_cast %38 : vector<8xf32> to vector<8x1xf32>
    %cst_23 = arith.constant 1.280000e+02 : f32
    %40 = vector.broadcast %cst_23 : f32 to vector<8x1xf32>
    %41 = arith.divf %39, %40 : vector<8x1xf32>
    %cst_24 = arith.constant 9.99999974E-6 : f32
    %42 = vector.broadcast %cst_24 : f32 to vector<8x1xf32>
    %43 = arith.addf %41, %42 : vector<8x1xf32>
    %44 = math.rsqrt %43 : vector<8x1xf32>
    %45 = vector.broadcast %44 : vector<8x1xf32> to vector<8x128xf32>
    %46 = arith.mulf %36, %45 : vector<8x128xf32>
    %47 = vector.broadcast %3 : vector<1x128xf32> to vector<8x128xf32>
    %48 = arith.mulf %46, %47 : vector<8x128xf32>
    %49 = vector.broadcast %4 : vector<1x128xf32> to vector<8x128xf32>
    %50 = arith.addf %48, %49 : vector<8x128xf32>
    %c0_25 = arith.constant 0 : index
    %c0_26 = arith.constant 0 : index
    %51 = vector.load %arg8[%c0_25, %c0_26] : memref<128x128xf32, #tpu.memory_space<vmem>>, vector<128x128xf32>
    %cst_27 = arith.constant dense<0.000000e+00> : vector<8x128xf32>
    %52 = tpu.matmul %50, %51, %cst_27 {dimension_numbers = #tpu.dot_dimension_numbers<[1], [0], [0], [1], [0, 0, 1, 1], [], []>} : vector<8x128xf32>, vector<128x128xf32>, vector<8x128xf32> -> vector<8x128xf32>
    %53 = vector.broadcast %6 : vector<1x128xf32> to vector<8x128xf32>
    %54 = arith.addf %52, %53 : vector<8x128xf32>
    %cst_28 = arith.constant 5.000000e-01 : f32
    %55 = vector.broadcast %cst_28 : f32 to vector<8x128xf32>
    %56 = arith.mulf %55, %54 : vector<8x128xf32>
    %cst_29 = arith.constant 0.707106769 : f32
    %57 = vector.broadcast %cst_29 : f32 to vector<8x128xf32>
    %58 = arith.mulf %54, %57 : vector<8x128xf32>
    %59 = math.erf %58 : vector<8x128xf32>
    %cst_30 = arith.constant 1.000000e+00 : f32
    %60 = vector.broadcast %cst_30 : f32 to vector<8x128xf32>
    %61 = arith.addf %60, %59 : vector<8x128xf32>
    %62 = arith.mulf %56, %61 : vector<8x128xf32>
    %c0_31 = arith.constant 0 : index
    %c0_32 = arith.constant 0 : index
    %63 = vector.load %arg10[%c0_31, %c0_32] : memref<8x128xf32, #tpu.memory_space<vmem>>, vector<8x128xf32>
    tpu.vector_store %arg10[%c0_31, %c0_32], %62 {strides = array<i32>} : memref<8x128xf32, #tpu.memory_space<vmem>>, vector<8x128xf32>,
    return
  }
  func.func @transform_0(%arg0: i32) -> (i32, i32) {
    %c0_i32 = arith.constant 0 : i32
    %c0_i32_0 = arith.constant 0 : i32
    return %arg0, %c0_i32 : i32, i32
  }
  func.func @transform_1(%arg0: i32) -> (i32, i32) {
    %c0_i32 = arith.constant 0 : i32
    %c0_i32_0 = arith.constant 0 : i32
    %c0_i32_1 = arith.constant 0 : i32
    return %c0_i32, %c0_i32_0 : i32, i32
  }
  func.func @transform_2(%arg0: i32) -> (i32, i32) {
    %c0_i32 = arith.constant 0 : i32
    %c0_i32_0 = arith.constant 0 : i32
    %c0_i32_1 = arith.constant 0 : i32
    return %c0_i32, %c0_i32_0 : i32, i32
  }
  func.func @transform_3(%arg0: i32) -> (i32, i32) {
    %c0_i32 = arith.constant 0 : i32
    %c0_i32_0 = arith.constant 0 : i32
    %c0_i32_1 = arith.constant 0 : i32
    return %c0_i32, %c0_i32_0 : i32, i32
  }
  func.func @transform_4(%arg0: i32) -> (i32, i32) {
    %c0_i32 = arith.constant 0 : i32
    %c0_i32_0 = arith.constant 0 : i32
    %c0_i32_1 = arith.constant 0 : i32
    return %c0_i32, %c0_i32_0 : i32, i32
  }
  func.func @transform_5(%arg0: i32) -> (i32, i32) {
    %c0_i32 = arith.constant 0 : i32
    %c0_i32_0 = arith.constant 0 : i32
    %c0_i32_1 = arith.constant 0 : i32
    return %c0_i32, %c0_i32_0 : i32, i32
  }
  func.func @transform_6(%arg0: i32) -> (i32, i32) {
    %c0_i32 = arith.constant 0 : i32
    %c0_i32_0 = arith.constant 0 : i32
    %c0_i32_1 = arith.constant 0 : i32
    return %c0_i32, %c0_i32_0 : i32, i32
  }
  func.func @transform_7(%arg0: i32) -> (i32, i32) {
    %c0_i32 = arith.constant 0 : i32
    %c0_i32_0 = arith.constant 0 : i32
    %c0_i32_1 = arith.constant 0 : i32
    return %c0_i32, %c0_i32_0 : i32, i32
  }
  func.func @transform_8(%arg0: i32) -> (i32, i32) {
    %c0_i32 = arith.constant 0 : i32
    %c0_i32_0 = arith.constant 0 : i32
    %c0_i32_1 = arith.constant 0 : i32
    return %c0_i32, %c0_i32_0 : i32, i32
  }
  func.func @transform_9(%arg0: i32) -> (i32, i32) {
    %c0_i32 = arith.constant 0 : i32
    %c0_i32_0 = arith.constant 0 : i32
    return %arg0, %c0_i32 : i32, i32
  }
}

</mosaic_0001>

<bundles_post_ra>
// kernel: base_encoder_forward.1
= control target key start
LH: loop header
LB: loop body
LE: loop exit
PB: predicated region body
PF: predicated region fallthrough
CT: control target
= control target key end

     0   :  { %14 = vsyncpa [#allocation3], 0  ;;  %s1464_s0 = inlined_call_operand.hbm [shape: f32[16,128], index: 0, kind: input, shape index: {}]   ;;  %s1465_s1 = inlined_call_operand.vmem [shape: f32[1,128], index: 1, kind: input, shape index: {}]   ;;  %s1466_s2 = inlined_call_operand.vmem [shape: f32[1,128], index: 2, kind: input, shape index: {}]   ;;  %s1467_s3 = inlined_call_operand.hbm [shape: f32[128,128], index: 3, kind: input, shape index: {}]   ;;  %s1468_s4 = inlined_call_operand.vmem [shape: f32[1,128], index: 4, kind: input, shape index: {}]   ;;  %s1469_s5 = inlined_call_operand.vmem [shape: f32[1,128], index: 5, kind: input, shape index: {}]   ;;  %s1470_s6 = inlined_call_operand.vmem [shape: f32[1,128], index: 6, kind: input, shape index: {}]   ;;  %s1471_s7 = inlined_call_operand.hbm [shape: f32[128,128], index: 7, kind: input, shape index: {}]   ;;  %s1472_s8 = inlined_call_operand.vmem [shape: f32[1,128], index: 8, kind: input, shape index: {}]   ;;  %s1473_s9 = inlined_call_operand.hbm [shape: f32[16,128], index: 9, kind: output, shape index: {}]  }
   0x1   :  { %16 = vsyncpa [#allocation3 + $0x1], 0 }
   0x2   :  { %17 = vsyncpa [#allocation6], 0 }
   0x3   :  { %18 = vsyncpa [#allocation4], 0 }
   0x4   :  { %20 = vsyncpa [#allocation4 + $0x1], 0  ;;  %s1197_s30 = smov 0   ;;  %s1199_s10 = smov 0  }
   0x5   :  { %s1201_s11 = smov 0   ;;  %s1203_s12 = smov 0  }
   0x6 LB: > { %s1218_s13 = sadd.s32 4294967295, %s1136_s12   ;;  %s728_s14 = sadd.s32 4294967294, %s1136_s12   ;;  %s1136_s12 = sphi %s1203_s12, %s1496_s12   ;;  %s1132_s11 = sphi %s1201_s11, %s1495_s11   ;;  %s1128_s10 = sphi %s1199_s10, %s1494_s10   ;;  %s1124_s30 = sphi %s1197_s30, %s1493_s30  }
   0x7   : > { %p46_p0 = scmp.ne.s32.totalorder %s1128_s10, %s1124_s30  ;;  %p1474_p1 = scmp.eq.s32.totalorder %s1218_s13, 0 }
   0x8   : > { %p244_p3 = scmp.eq.s32.totalorder %s728_s14, 1  ;;  %p729_p5 = scmp.ge.s32.totalorder %s1136_s12, 1 }
   0x9   : > { %p1227_p4 = por %p1474_p1, %p46_p0  ;;  %p251_p7 = scmp.lt.s32.totalorder %s1136_s12, 3 }
   0xa   : > { %p1232_p6 = por %p244_p3, %p46_p0  ;;  %s1138_s18 = smov [#allocation5]  }
   0xb   : > { %s1478_s15 = scalar_select %p1227_p4, 1, 0 }
   0xc   : > { %s1479_s16 = scalar_select %p1232_p6, 1, 0 }
   0xd   : > { %p1237_p8 = pnand %p729_p5, %p251_p7  ;;  %s269_s19 = sshll.u32 %s1138_s18, 4  ;;  %s1241_s19 = int_to_ptr.vmem [resolvable:$true] %s269_s19 }
   0xe   : > { %1480 = sst [smem:[#allocation12_spill]] %s1479_s16  ;;  %s1139_s21 = smov [#allocation7]  }
   0xf   : > { %p914_p9 = pneg %p1237_p8  ;;  %s291_s22 = sshll.u32 %s1139_s21, 4  ;;  %s1252_s22 = int_to_ptr.vmem [resolvable:$true] %s291_s22 }
  0x10   : > { %s980_s25 = scalar_lea.hbm %s1467_s3, 2048 }
  0x11   : > { %p1248_p11 = pnand %p914_p9, %p1474_p1  ;;  %p981_p12 = scmp.ne.s32.totalorder %s1467_s3, %s980_s25 }
  0x12   : > { %p987_p5 = scmp.lt.u32.totalorder %s980_s25, %s1467_s3 }
  0x13   : > { %p982_p13 = pneg %p1248_p11 }
  0x15   : > { %p983_p0 = pnand %p982_p13, %p981_p12 }
  0x17   : > { %p984_p3 = pneg %p983_p0 }
  0x19   : > { %p989_p7 = pnand %p987_p5, %p984_p3 }
  0x1b   : > { %992 = shalt.err (!%p989_p7)
}
  0x1c   : > { %s993_s14 = scalar_lea.vmem %s1241_s19, 2048  ;;  %p1001_p2 = scmp.lt.s32.totalorder %s1241_s19, %s1241_s19 }
  0x1d   : > { %p994_p9 = scmp.ne.s32.totalorder %s1241_s19, %s993_s14  ;;  %p1002_p12 = scmp.lt.s32.totalorder %s993_s14, %s993_s14 }
  0x1f   : > { %p996_p10 = pnand %p994_p9, %p982_p13  ;;  %p1003_p0 = por %p1002_p12, %p1001_p2 }
  0x21   : > { %p997_p1 = pneg %p996_p10 }
  0x23   : > { %p1004_p6 = pnand %p1003_p0, %p997_p1 }
  0x25   : > { %1007 = shalt.err (!%p1004_p6)
}
  0x26   : > { %s1140_s18 = smov 128   ;;  %s1141_s21 = smov 8  }
  0x27   : > { %917 = dma.hbm_to_vmem [thread:$0]  (!%p1248_p11), %s1467_s3, 2048, %s1241_s19, [#allocation6], %s1140_s18, %s1140_s18, %s1141_s21  }
  0x28   : > { %s1008_s27 = scalar_lea.hbm %s1471_s7, 2048 }
  0x29   : > { %p1009_p2 = scmp.ne.s32.totalorder %s1471_s7, %s1008_s27  ;;  %p1015_p10 = scmp.lt.u32.totalorder %s1008_s27, %s1471_s7 }
  0x2b   : > { %p1011_p1 = pnand %p1009_p2, %p982_p13 }
  0x2d   : > { %p1012_p6 = pneg %p1011_p1 }
  0x2f   : > { %p1017_p3 = pnand %p1015_p10, %p1012_p6 }
  0x31   : > { %1020 = shalt.err (!%p1017_p3)
}
  0x32   : > { %s1021_s19 = scalar_lea.vmem %s1252_s22, 2048  ;;  %p1029_p12 = scmp.lt.s32.totalorder %s1252_s22, %s1252_s22 }
  0x33   : > { %p1022_p5 = scmp.ne.s32.totalorder %s1252_s22, %s1021_s19  ;;  %p1030_p0 = scmp.lt.s32.totalorder %s1021_s19, %s1021_s19 }
  0x35   : > { %p1024_p7 = pnand %p1022_p5, %p982_p13  ;;  %p1031_p2 = por %p1030_p0, %p1029_p12 }
  0x37   : > { %p1025_p9 = pneg %p1024_p7 }
  0x39   : > { %p1032_p1 = pnand %p1031_p2, %p1025_p9 }
  0x3b   : > { %1035 = shalt.err (!%p1032_p1)
}
  0x3c   : > { %920 = dma.hbm_to_vmem [thread:$0]  (!%p1248_p11), %s1471_s7, 2048, %s1252_s22, [#allocation6], %s1140_s18, %s1140_s18, %s1141_s21  }
  0x3d   : > { %s1307_s24 = sadd.s32 1, %s1136_s12   ;;  %s33_s20 = sadd.s32 1, %s1132_s11 }
  0x3e   : > { %s30_s25 = ssub.s32 %s1136_s12, %s1307_s24  ;;  %p40_p13 = scmp.ne.s32.totalorder %s1132_s11, %s1128_s10 }
  0x3f   : > { %p31_p6 = scmp.eq.s32.totalorder %s30_s25, 0  ;;  %p41_p10 = scmp.eq.s32.totalorder %s1136_s12, 0 }
  0x40   : > { %p1483_p3 = scmp.eq.s32.totalorder %s1218_s13, 1  ;;  %p931_p7 = scmp.lt.s32.totalorder %s1136_s12, 2 }
  0x41   : > { %s1323_s27 = scalar_select %p31_p6, %s1132_s11, %s33_s20  }
  0x42   : > { %p1317_p5 = por %p1483_p3, %p40_p13  ;;  %p42_p9 = por %p41_p10, %p40_p13 }
  0x43   : > { %s308_s28 = sand.u32 1, %s1132_s11   ;;  %s734_s22 = sshll.u32 %s1136_s12, 7 }
  0x44   : > { %s1484_s26 = scalar_select %p1317_p5, 1, 0 }
  0x45   : > { %s733_s29 = sshll.u32 %s308_s28, 3  ;;  %s1330_s14 = scalar_lea.hbm %s1464_s0, %s734_s22 }
  0x46   : > { %s312_s19 = scalar_lea.vmem [#allocation2], %s733_s29  ;;  %p1334_p11 = pnand %p931_p7, %p42_p9 }
  0x47   : > { %s319_s16 = sshll.u32 %s312_s19, 4  ;;  %s309_s20 = scalar_lea.sflag [#allocation3], %s308_s28  ;;  %s1332_s16 = int_to_ptr.vmem [resolvable:$true] %s319_s16 }
  0x48   : > { %s1036_s25 = scalar_lea.hbm %s1330_s14, 128  ;;  %p1038_p0 = pneg %p1334_p11 }
  0x49   : > { %p1037_p12 = scmp.ne.s32.totalorder %s1330_s14, %s1036_s25  ;;  %s1041_s18 = scalar_lea.hbm %s1464_s0, 256 }
  0x4a   : > { %p1042_p13 = scmp.lt.u32.totalorder %s1330_s14, %s1464_s0  ;;  %p1043_p6 = scmp.lt.u32.totalorder %s1041_s18, %s1036_s25 }
  0x4b   : > { %p1039_p2 = pnand %p1038_p0, %p1037_p12  ;;  %p1045_p3 = scmp.lt.u32.totalorder %s1036_s25, %s1330_s14 }
  0x4c   : > { %p1044_p10 = por %p1043_p6, %p1042_p13 }
  0x4d   : > { %p1040_p1 = pneg %p1039_p2 }
  0x4e   : > { %p1046_p7 = por %p1045_p3, %p1044_p10 }
  0x50   : > { %p1047_p9 = pnand %p1046_p7, %p1040_p1 }
  0x52   : > { %1050 = shalt.err (!%p1047_p9)
}
  0x53   : > { %s1051_s28 = scalar_lea.vmem %s1332_s16, 128  ;;  %s1142_s22 = smov [#allocation2]  }
  0x54   : > { %p1052_p12 = scmp.ne.s32.totalorder %s1332_s16, %s1051_s28  ;;  %s1056_s29 = sshll.u32 %s1142_s22, 4  ;;  %s1057_s29 = int_to_ptr.vmem [resolvable:$false] %s1056_s29 }
  0x55   : > { %s1058_s21 = scalar_lea.vmem %s1057_s29, 256  ;;  %p1059_p4 = scmp.lt.s32.totalorder %s1332_s16, %s1057_s29 }
  0x56   : > { %p1054_p2 = pnand %p1052_p12, %p1038_p0  ;;  %p1060_p13 = scmp.lt.s32.totalorder %s1058_s21, %s1051_s28 }
  0x58   : > { %p1055_p5 = pneg %p1054_p2  ;;  %p1061_p6 = por %p1060_p13, %p1059_p4 }
  0x5a   : > { %p1062_p10 = pnand %p1061_p6, %p1055_p5 }
  0x5c   : > { %1065 = shalt.err (!%p1062_p10)
}
  0x5d   : > { %924 = dma.hbm_to_vmem [thread:$0]  (!%p1334_p11), %s1330_s14, 128, %s1332_s16, %s309_s20  }
  0x5e   : > { %328 = sbr.rel (%p1237_p8) target bundleno = 1187 (0x4a3), region = 56  ;;  %s1366_s25 = sand.u32 (!%p1237_p8), 1, %s1128_s10  }
  0x5f   : > { %s736_s18 = sshll.u32 (!%p1237_p8), %s1366_s25, 3  ;;  %s331_s19 = scalar_lea.sflag (!%p1237_p8), [#allocation3], %s1366_s25 }
  0x60   : > { %s334_s28 = scalar_lea.vmem (!%p1237_p8), [#allocation2], %s736_s18  ;;  %p1486_p4 = scmp.ne.s32.totalorder (!%p1237_p8), %s1478_s15, 0 }
  0x65   : > { %1111 = dma.done.wait (%p1486_p4), %s331_s19, 128  }
  0x66   : > { %1113 = vsyncadd (%p1486_p4), %s331_s19, 4294967168  ;;  %p1487_p5 = scmp.eq.s32.totalorder %s1218_s13, 0 }
  0x68   : > { %1115 = dma.done.wait (%p1487_p5), [#allocation6], 4096   ;;  %p1488_p8 = pmov %p1487_p5 }
  0x69   : > { %v377_v0 = vld [vmem:[%s334_s28] sm:$0xff]  ;;  %v410_v1 = vld [vmem:[#allocation5] sm:$0xff]  ;;  %v411_v2 = vld [vmem:[#allocation5 + $0x8] sm:$0xff]  ;;  %v1143_v4 = vmov 0.0|0.0   ;;  %vm1144_vm0 = vmmov 0   ;;  %v1145_v23 = vmov 0.0  }
  0x6a   : > { %1117 = vsyncadd (%p1488_p8), [#allocation6], 4294963200  ;;  %384 = vadd.xlane.f32.xlu0 %v377_v0  ;;  %v412_v3 = vld [vmem:[#allocation5 + $0x10] sm:$0xff]  ;;  %854 = vmatprep.subr.bf16.mxu0 %v1143_v4  ;;  %v855_v5 = vpack.c.bf16 %v411_v2, %v410_v1  ;;  %v413_v6 = vld [vmem:[#allocation5 + $0x18] sm:$0xff]  ;;  %s747_s17 = sshll.u32 %s1218_s13, 7  ;;  %s376_s14 = scalar_lea.vmem [#allocation8], %s736_s18 }
  0x6b   : > { %878 = vmatprep.subr.bf16.mxu1 %v1143_v4  ;;  %v858_v7 = vpack.c.bf16 %v413_v6, %v412_v3  ;;  %v414_v8 = vld [vmem:[#allocation5 + $0x20] sm:$0xff]  ;;  %v415_v9 = vld [vmem:[#allocation5 + $0x28] sm:$0xff]  ;;  %v416_v15 = vld [vmem:[#allocation5 + $0x30] sm:$0xff]  ;;  %816 = vmatprep.mubr.msk.f32.mxu0 %vm1144_vm0, %v1145_v23  ;;  %s639_s16 = sshll.u32 %s376_s14, 4  ;;  %s1420_s22 = scalar_lea.hbm %s1473_s9, %s747_s17  ;;  %s1422_s16 = int_to_ptr.vmem [resolvable:$true] %s639_s16 }
  0x6c   : > { %856 = vmatpush3.bf16.msra.mxu0 %v855_v5  ;;  %v861_v10 = vpack.c.bf16 %v415_v9, %v414_v8  ;;  %v417_v16 = vld [vmem:[#allocation5 + $0x38] sm:$0xff]  ;;  %v418_v18 = vld [vmem:[#allocation5 + $0x40] sm:$0xff]  ;;  %v419_v19 = vld [vmem:[#allocation5 + $0x48] sm:$0xff]  ;;  %851 = vmatprep.mubr.msk.f32.mxu1 %vm1144_vm0, %v1145_v23  ;;  %s626_s29 = scalar_lea.sflag [#allocation4], %s1366_s25  ;;  %s1066_s21 = scalar_lea.vmem %s1422_s16, 128 }
  0x6d   : > { %857 = vmatprep.subr.bf16.mxu0 %v1143_v4  ;;  %v864_v17 = vpack.c.bf16 %v417_v16, %v416_v15  ;;  %v867_v20 = vpack.c.bf16 %v419_v19, %v418_v18  ;;  %v420_v21 = vld [vmem:[#allocation5 + $0x50] sm:$0xff]  ;;  %v421_v22 = vld [vmem:[#allocation5 + $0x58] sm:$0xff]  ;;  %v422_v25 = vld [vmem:[#allocation5 + $0x60] sm:$0xff]  ;;  %p1067_p11 = scmp.ne.s32.totalorder %s1422_s16, %s1066_s21  ;;  %p1489_p0 = scmp.ne.s32.totalorder %s1484_s26, 0 }
  0x6e   : > { %v870_v24 = vpack.c.bf16 %v421_v22, %v420_v21  ;;  %v423_v26 = vld [vmem:[#allocation5 + $0x68] sm:$0xff]  ;;  %v424_v28 = vld [vmem:[#allocation5 + $0x70] sm:$0xff]  ;;  %v425_v29 = vld [vmem:[#allocation5 + $0x78] sm:$0xff]  ;;  %s1146_s13 = smov [#allocation8]  }
  0x6f   : > { %v873_v27 = vpack.c.bf16 %v423_v26, %v422_v25  ;;  %v876_v30 = vpack.c.bf16 %v425_v29, %v424_v28  ;;  %v740_v35 = vld [vmem:[%s1465_s1] ss:$0 sm:$0xff]  ;;  %v527_v44 = vld [vmem:[#allocation7] sm:$0xff]  ;;  %v528_v45 = vld [vmem:[#allocation7 + $0x8] sm:$0xff]  ;;  %p1068_p1 = pnand %p1067_p11, %p1489_p0  ;;  %s1070_s18 = sshll.u32 %s1146_s13, 4  ;;  %s1071_s18 = int_to_ptr.vmem [resolvable:$false] %s1070_s18 }
  0x70   : > { %859 = vmatpush3.bf16.msra.mxu0 %v858_v7  ;;  %v741_v37 = vld [vmem:[%s1466_s2] ss:$0 sm:$0xff]  ;;  %v879_v47 = vpack.c.bf16 %v528_v45, %v527_v44  ;;  %v530_v48 = vld [vmem:[#allocation7 + $0x18] sm:$0xff]  ;;  %v531_v50 = vld [vmem:[#allocation7 + $0x20] sm:$0xff]  ;;  %s1072_s19 = scalar_lea.vmem %s1071_s18, 256  ;;  %p1073_p7 = scmp.lt.s32.totalorder %s1422_s16, %s1071_s18 }
  0x71   : > { %860 = vmatprep.subr.bf16.mxu0 %v1143_v4  ;;  %v742_v40 = vld [vmem:[%s1468_s4] ss:$0 sm:$0xff]  ;;  %v532_v51 = vld [vmem:[#allocation7 + $0x28] sm:$0xff]  ;;  %v534_v58 = vld [vmem:[#allocation7 + $0x38] sm:$0xff]  ;;  %p1069_p3 = pneg %p1068_p1  ;;  %p1074_p9 = scmp.lt.s32.totalorder %s1072_s19, %s1066_s21 }
  0x72   : > { %v529_v46 = vld [vmem:[#allocation7 + $0x10] sm:$0xff]  ;;  %880 = vmatpush3.bf16.msra.mxu1 %v879_v47  ;;  %v885_v52 = vpack.c.bf16 %v532_v51, %v531_v50  ;;  %v535_v60 = vld [vmem:[#allocation7 + $0x40] sm:$0xff]  ;;  %v536_v61 = vld [vmem:[#allocation7 + $0x48] sm:$0xff] }
  0x73   : > { %v882_v49 = vpack.c.bf16 %v530_v48, %v529_v46  ;;  %881 = vmatprep.subr.bf16.mxu1 %v1143_v4  ;;  %v533_v57 = vld [vmem:[#allocation7 + $0x30] sm:$0xff]  ;;  %v891_v62 = vpack.c.bf16 %v536_v61, %v535_v60  ;;  %v539_v2 = vld [vmem:[#allocation7 + $0x60] sm:$0xff]  ;;  %v540_v3 = vld [vmem:[#allocation7 + $0x68] sm:$0xff]  ;;  %p1075_p12 = por %p1074_p9, %p1073_p7 }
  0x74   : > { %862 = vmatpush3.bf16.msra.mxu0 %v861_v10  ;;  %v888_v59 = vpack.c.bf16 %v534_v58, %v533_v57  ;;  %v537_v63 = vld [vmem:[#allocation7 + $0x50] sm:$0xff]  ;;  %v897_v5 = vpack.c.bf16 %v540_v3, %v539_v2  ;;  %v542_v7 = vld [vmem:[#allocation7 + $0x78] sm:$0xff] }
  0x75   : > { %863 = vmatprep.subr.bf16.mxu0 %v1143_v4  ;;  %v541_v6 = vld [vmem:[#allocation7 + $0x70] sm:$0xff]  ;;  %p1076_p2 = pnand %p1075_p12, %p1069_p3 }
  0x76   : > { %883 = vmatpush3.bf16.msra.mxu1 %v882_v49  ;;  %v900_v8 = vpack.c.bf16 %v542_v7, %v541_v6  ;;  %v744_v15 = vld [vmem:[%s1470_s6] ss:$0 sm:$0xff] }
  0x77   : > { %884 = vmatprep.subr.bf16.mxu1 %v1143_v4 }
  0x78   : > { %865 = vmatpush3.bf16.msra.mxu0 %v864_v17 }
  0x79   : > { %866 = vmatprep.subr.bf16.mxu0 %v1143_v4 }
  0x7a   : > { %886 = vmatpush3.bf16.msra.mxu1 %v885_v52 }
  0x7b   : > { %887 = vmatprep.subr.bf16.mxu1 %v1143_v4 }
  0x7c   : > { %868 = vmatpush3.bf16.msra.mxu0 %v867_v20 }
  0x7d   : > { %869 = vmatprep.subr.bf16.mxu0 %v1143_v4 }
  0x7e   : > { %889 = vmatpush3.bf16.msra.mxu1 %v888_v59 }
  0x7f   : > { %890 = vmatprep.subr.bf16.mxu1 %v1143_v4 }
  0x80   : > { %871 = vmatpush3.bf16.msra.mxu0 %v870_v24 }
  0x81   : > { %872 = vmatprep.subr.bf16.mxu0 %v1143_v4 }
  0x82   : > { %892 = vmatpush3.bf16.msra.mxu1 %v891_v62 }
  0x83   : > { %893 = vmatprep.subr.bf16.mxu1 %v1143_v4 }
  0x84   : > { %874 = vmatpush3.bf16.msra.mxu0 %v873_v27 }
  0x85   : > { %875 = vmatprep.subr.bf16.mxu0 %v1143_v4 }
  0x88   : > { %877 = vmatpush3.bf16.msra.mxu0 %v876_v30 }
  0xf7   : > { %v385_v11 = vpop.xlane.xlu0 %384 }
  0xf8   : > { %v387_v12 = vmul.f32 0.0078125, %v385_v11 }
  0xfa   : > { %v388_v13 = vsub.f32 %v377_v0, %v387_v12  ;;  %v538_v0 = vld [vmem:[#allocation7 + $0x58] sm:$0xff] }
  0xfb   : > { %v894_v1 = vpack.c.bf16 %v538_v0, %v537_v63 }
  0xfc   : > { %v389_v14 = vmul.f32 %v388_v13, %v388_v13 }
  0xfd   : > { %895 = vmatpush3.bf16.msra.mxu1 %v894_v1 }
  0xfe   : > { %390 = vadd.xlane.f32.xlu0 %v389_v14  ;;  %896 = vmatprep.subr.bf16.mxu1 %v1143_v4 }
 0x101   : > { %898 = vmatpush3.bf16.msra.mxu1 %v897_v5 }
 0x102   : > { %899 = vmatprep.subr.bf16.mxu1 %v1143_v4  ;;  %v745_v4 = vld [vmem:[%s1472_s8] ss:$0 sm:$0xff] }
 0x105   : > { %901 = vmatpush3.bf16.msra.mxu1 %v900_v8 }
 0x18b   : > { %v391_v31 = vpop.xlane.xlu0 %390 }
 0x18c   : > { %v392_v32 = vmul.f32 0.0078125, %v391_v31 }
 0x18e   : > { %v393_v33 = vadd.f32 1e-05, %v392_v32 }
 0x190   : > { %974 = vrsqrt.f32 %v393_v33 }
 0x19a   : > { %v975_v34 = vpop.eup %974 }
 0x19b   : > { %v395_v36 = vmul.f32 %v975_v34, %v388_v13  ;;  %v743_v13 = vld [vmem:[%s1469_s5] ss:$0 sm:$0xff] }
 0x19d   : > { %v402_v38 = vmul.f32 %v740_v35, %v395_v36 }
 0x19f   : > { %v409_v39 = vadd.f32 %v741_v37, %v402_v38 }
 0x1a1   : > { %817 = vmatmul.mubr.f32.vlgmr.msra.gmra.mrb[0].mxu0 %v409_v39 }
 0x274   : > { %v498_v41 = vpop.f32.mrb[0].mxu0 }
 0x275   : > { %v499_v42 = vadd.f32 %v742_v40, %v498_v41  ;;  %v818_v43 = vpop.f32.mrb[1].mxu0 }
 0x277   : > { %502 = vadd.xlane.f32.xlu1 %v499_v42 }
 0x304   : > { %v503_v53 = vpop.xlane.xlu1 %502 }
 0x305   : > { %v504_v54 = vmul.f32 0.0078125, %v503_v53 }
 0x307   : > { %v505_v55 = vsub.f32 %v499_v42, %v504_v54 }
 0x309   : > { %v506_v56 = vmul.f32 %v505_v55, %v505_v55 }
 0x30b   : > { %507 = vadd.xlane.f32.xlu1 %v506_v56 }
 0x398   : > { %v508_v9 = vpop.xlane.xlu1 %507 }
 0x399   : > { %v509_v10 = vmul.f32 0.0078125, %v508_v9 }
 0x39b   : > { %v510_v11 = vadd.f32 1e-05, %v509_v10 }
 0x39d   : > { %976 = vrsqrt.f32 %v510_v11 }
 0x3a7   : > { %v977_v12 = vpop.eup %976 }
 0x3a8   : > { %v512_v14 = vmul.f32 %v977_v12, %v505_v55 }
 0x3aa   : > { %v519_v16 = vmul.f32 %v743_v13, %v512_v14 }
 0x3ac   : > { %v526_v17 = vadd.f32 %v744_v15, %v519_v16 }
 0x3ae   : > { %852 = vmatmul.mubr.f32.vlgmr.msra.gmra.mrb[0].mxu1 %v526_v17 }
 0x481   : > { %v615_v18 = vpop.f32.mrb[0].mxu1 }
 0x482   : > { %v616_v19 = vadd.f32 %v745_v4, %v615_v18  ;;  %v853_v20 = vpop.f32.mrb[1].mxu1 }
 0x484   : > { %v620_v21 = vmul.f32 0.70710677, %v616_v19  ;;  %v619_v23 = vmul.f32 0.5, %v616_v19 }
 0x486   : > { %978 = verf.f32 %v620_v21 }
 0x490   : > { %v979_v22 = vpop.eup %978 }
 0x491   : > { %v622_v24 = vadd.f32 1.0, %v979_v22 }
 0x493   : > { %v623_v25 = vmul.f32 %v622_v24, %v619_v23 }
 0x495   : > { %624 = vst [vmem:[%s376_s14] sm:$0xff] %v623_v25 }
 0x496   : > { %1079 = shalt.err (!%p1076_p2)
}
 0x497   : > { %s1080_s25 = scalar_lea.hbm %s1420_s22, 128  ;;  %s1084_s17 = scalar_lea.hbm %s1473_s9, 256 }
 0x498   : > { %p1081_p13 = scmp.ne.s32.totalorder %s1420_s22, %s1080_s25  ;;  %p1085_p4 = scmp.lt.u32.totalorder %s1420_s22, %s1473_s9 }
 0x499   : > { %p1086_p5 = scmp.lt.u32.totalorder %s1084_s17, %s1080_s25  ;;  %p1088_p11 = scmp.lt.u32.totalorder %s1080_s25, %s1420_s22 }
 0x49a   : > { %p1082_p6 = pnand %p1081_p13, %p1489_p0 }
 0x49b   : > { %p1087_p8 = por %p1086_p5, %p1085_p4 }
 0x49c   : > { %p1083_p10 = pneg %p1082_p6 }
 0x49d   : > { %p1089_p1 = por %p1088_p11, %p1087_p8 }
 0x49f   : > { %p1090_p3 = pnand %p1089_p1, %p1083_p10 }
 0x4a1   : > { %1093 = shalt.err (!%p1090_p3)
}
 0x4a2   : > { %912 = dma.vmem_to_hbm [thread:$0]  (%p1489_p0), %s1422_s16, 128, %s1420_s22, %s626_s29  }
 0x4a3 PF: > { %s1490_s20 = sld [smem:[#allocation12_spill]]  ;;  %s651_s21 = sand.u32 1, %s1124_s30  }
 0x4a4   : > { %p1492_p9 = scmp.ge.s32.totalorder %s1136_s12, 2  ;;  %s652_s13 = scalar_lea.sflag [#allocation4], %s651_s21 }
 0x4a9   : > { %p1491_p7 = scmp.ne.s32.totalorder %s1490_s20, 0 }
 0x4ab   : > { %p926_p12 = pnand %p1492_p9, %p1491_p7 }
 0x4ad   : > { %1119 = dma.done.wait (!%p926_p12), %s652_s13, 128  }
 0x4ae   : > { %1121 = vsyncadd (!%p926_p12), %s652_s13, 4294967168  ;;  %p23_p2 = scmp.ge.s32.totalorder %s1307_s24, 4   ;;  %s1493_s30 = smov %s1128_s10 }
 0x4af   : > { %s1494_s10 = smov %s1132_s11  ;;  %s1495_s11 = smov %s1323_s27 }
 0x4b0   : > { %s1496_s12 = smov %s1307_s24  ;;  %25 = sbr.rel (!%p23_p2) target bundleno = 6 (0x6), region = 109 }
 0x4b7   :  { %657 = vsyncpa [#allocation3], 1 }
 0x4b8   :  { %659 = vsyncpa [#allocation3 + $0x1], 1 }
 0x4b9   :  { %660 = vsyncpa [#allocation6], 1 }
 0x4ba   :  { %661 = vsyncpa [#allocation4], 1 }
 0x4bb   :  { %663 = vsyncpa [#allocation4 + $0x1], 1 }

</bundles_post_ra>
